<compile_context>
chip_gen: v5e
topology: v5e:2x2
jax: 0.10.0
libtpu: 0.0.40
codegen_flags: <defaults>
</compile_context>

<pallas_src>
import jax
import jax.numpy as jnp
from jax.experimental import pallas as pl
from jax.experimental.pallas import tpu as pltpu

_LANE = 128     # lane width (last dim)
_SUBLANE = 8    # f32 sublane count (second-to-last dim)


def _round_up(a, m):
    return (a + m - 1) // m * m


def _mlp_kernel(xt_ref, w1t_ref, w2t_ref, bias_ref, o_ref):
    hid_p = w1t_ref.shape[0]                      # static block dim
    # Hidden layer: h^T = W1^T @ x^T : (hid_p, obs_p) @ (obs_p, tb) -> (hid_p, tb)
    h = jnp.dot(w1t_ref[...], xt_ref[...], preferred_element_type=jnp.float32)
    h = h + bias_ref[:hid_p, :]                   # f32 bias add, broadcast over batch lanes
    h = jnp.maximum(h, 0.0)                       # ReLU in f32 (VPU)
    # Output layer: q^T = W2^T @ h^T : (act_p, hid_p) @ (hid_p, tb) -> (act_p, tb)
    q = jnp.dot(w2t_ref[...], h.astype(w2t_ref.dtype),
                preferred_element_type=jnp.float32)
    q = q + bias_ref[hid_p:, :]                   # f32 bias add
    o_ref[...] = q.astype(o_ref.dtype)            # lane-dense store


def ffnn_forward(x, w1, b1, w2, b2, *, block_b=None, compute_dtype=None):
    """Q-network forward pass. x: (B, obs) -> (B, action)."""
    B, obs = x.shape
    hidden = w1.shape[1]
    action = w2.shape[1]
    assert w1.shape == (obs, hidden) and b1.shape == (hidden,)
    assert w2.shape == (hidden, action) and b2.shape == (action,)

    out_dtype = x.dtype
    if compute_dtype is None:
        compute_dtype = x.dtype
    in_itemsize = jnp.dtype(compute_dtype).itemsize
    out_itemsize = jnp.dtype(out_dtype).itemsize

    # Padded feature dims: features sit on the sublane axis, hidden is the
    # contraction / lane dim of the weights -> pad to 128.
    obs_p = _round_up(obs, _SUBLANE)
    hid_p = _round_up(hidden, _LANE)
    act_p = _round_up(action, _SUBLANE)

    # Batch tile: lane axis, so multiples of 128; cap so double-buffered
    # streamed tiles (x^T tile + output tile) stay well under the v7x VMEM
    # budget (resident weights/bias are only a few KiB).
    if block_b is None:
        block_b = 512
    block_b = max(_LANE, _round_up(block_b, _LANE))
    per_col_bytes = 2 * (obs_p * in_itemsize + act_p * out_itemsize)  # 2-deep buffers
    max_cols = max(_LANE, ((8 * 1024 * 1024) // per_col_bytes) // _LANE * _LANE)
    block_b = min(block_b, max_cols)
    block_b = min(block_b, _round_up(B, _LANE))

    B_p = _round_up(B, block_b)
    grid = (B_p // block_b,)

    # Layout plumbing in plain JAX: transpose so batch is the lane axis and
    # zero-pad. Zero padding is exact: padded obs rows are zero in x^T, padded
    # hidden rows get b1=0 -> relu(0)=0, padded action rows get zero weights.
    xt = jnp.zeros((obs_p, B_p), compute_dtype).at[:obs, :B].set(
        x.T.astype(compute_dtype))
    w1t = jnp.zeros((hid_p, obs_p), compute_dtype).at[:hidden, :obs].set(
        w1.T.astype(compute_dtype))
    w2t = jnp.zeros((act_p, hid_p), compute_dtype).at[:action, :hidden].set(
        w2.T.astype(compute_dtype))
    bias = jnp.zeros((hid_p + act_p, 1), jnp.float32)
    bias = bias.at[:hidden, 0].set(b1.astype(jnp.float32))
    bias = bias.at[hid_p:hid_p + action, 0].set(b2.astype(jnp.float32))

    flops = 2 * B_p * (obs_p * hid_p + hid_p * act_p)
    bytes_accessed = (xt.size * in_itemsize + w1t.size * in_itemsize
                      + w2t.size * in_itemsize + bias.size * 4
                      + act_p * B_p * out_itemsize)

    qt = pl.pallas_call(
        _mlp_kernel,
        out_shape=jax.ShapeDtypeStruct((act_p, B_p), out_dtype),
        grid_spec=pltpu.PrefetchScalarGridSpec(
            num_scalar_prefetch=0,
            grid=grid,
            in_specs=[
                pl.BlockSpec((obs_p, block_b), lambda i: (0, i)),    # x^T batch tile (streamed)
                pl.BlockSpec((hid_p, obs_p), lambda i: (0, 0)),      # W1^T (resident)
                pl.BlockSpec((act_p, hid_p), lambda i: (0, 0)),      # W2^T (resident)
                pl.BlockSpec((hid_p + act_p, 1), lambda i: (0, 0)),  # packed b1|b2 (resident)
            ],
            out_specs=pl.BlockSpec((act_p, block_b), lambda i: (0, i)),
        ),
        compiler_params=pltpu.CompilerParams(
            dimension_semantics=("parallel",),   # batch axis: pipelined + megacore-shardable
        ),
        cost_estimate=pl.CostEstimate(
            flops=flops, transcendentals=0, bytes_accessed=bytes_accessed),
    )(xt, w1t, w2t, bias)

    # Strip padding and return in the module's (B, action) layout.
    return qt[:action, :B].T


def init_params(key, obs_space_size, action_space_size, hidden=64,
                dtype=jnp.float32):
    """Deterministic init matching nn.Linear default (uniform +/-1/sqrt(fan_in))."""
    k1, k2, k3, k4 = jax.random.split(key, 4)
    lim1 = 1.0 / jnp.sqrt(jnp.float32(obs_space_size))
    lim2 = 1.0 / jnp.sqrt(jnp.float32(hidden))
    w1 = jax.random.uniform(k1, (obs_space_size, hidden), dtype, -lim1, lim1)
    b1 = jax.random.uniform(k2, (hidden,), dtype, -lim1, lim1)
    w2 = jax.random.uniform(k3, (hidden, action_space_size), dtype, -lim2, lim2)
    b2 = jax.random.uniform(k4, (action_space_size,), dtype, -lim2, lim2)
    return w1, b1, w2, b2


if __name__ == "__main__":
    key = jax.random.PRNGKey(0)
    kx, kp, kx2 = jax.random.split(key, 3)

    obs_space_size = 8      # e.g. LunarLander observation size
    action_space_size = 4   # e.g. LunarLander action count
    batch = 16

    x = jax.random.normal(kx, (batch, obs_space_size), dtype=jnp.float32)
    w1, b1, w2, b2 = init_params(kp, obs_space_size, action_space_size)
    ref = jnp.maximum(x @ w1 + b1, 0.0) @ w2 + b2

    # f32 run (single tile).
    q = jax.block_until_ready(ffnn_forward(x, w1, b1, w2, b2))
    assert q.shape == (batch, action_space_size)
    assert jnp.allclose(q, ref, atol=1e-4, rtol=1e-4)

    # Multi-tile grid + batch-padding path (B % block_b != 0, grid of 3 steps).
    batch2 = 300
    x2 = jax.random.normal(kx2, (batch2, obs_space_size), dtype=jnp.float32)
    ref2 = jnp.maximum(x2 @ w1 + b1, 0.0) @ w2 + b2
    q2 = jax.block_until_ready(ffnn_forward(x2, w1, b1, w2, b2, block_b=128))
    assert q2.shape == (batch2, action_space_size)
    assert jnp.allclose(q2, ref2, atol=1e-4, rtol=1e-4)

    # bf16 inputs (MXU-native on v6e/v7x), f32 accumulation + f32 bias/ReLU.
    q_bf16 = jax.block_until_ready(
        ffnn_forward(x, w1, b1, w2, b2, compute_dtype=jnp.bfloat16))
    assert q_bf16.shape == (batch, action_space_size)
    assert jnp.allclose(q_bf16, ref, atol=5e-2, rtol=5e-2)

    print("KERNEL_OK")
</pallas_src>

<mosaic_0001>
module attributes {stable_mosaic.version = 11 : i64} {
  func.func @_mlp_kernel(%arg0: i32, %arg1: memref<8x128xf32, #tpu.memory_space<vmem>>, %arg2: memref<128x8xf32, #tpu.memory_space<vmem>>, %arg3: memref<8x128xf32, #tpu.memory_space<vmem>>, %arg4: memref<136x1xf32, #tpu.memory_space<vmem>>, %arg5: memref<8x128xf32, #tpu.memory_space<vmem>>) attributes {dimension_semantics = [#tpu.dimension_semantics<parallel>], iteration_bounds = array<i64: 1>, scalar_prefetch = 0 : i64, scratch_operands = 0 : i64, tpu.core_type = #tpu.core_type<tc>, window_params = [{transform_indices = @transform_0, window_bounds = array<i64: 8, 128>}, {pipeline_mode = #tpu.pipeline_mode<synchronous>, transform_indices = @transform_1, window_bounds = array<i64: 128, 8>}, {pipeline_mode = #tpu.pipeline_mode<synchronous>, transform_indices = @transform_2, window_bounds = array<i64: 8, 128>}, {pipeline_mode = #tpu.pipeline_mode<synchronous>, transform_indices = @transform_3, window_bounds = array<i64: 136, 1>}, {transform_indices = @transform_4, window_bounds = array<i64: 8, 128>}]} {
    %c0 = arith.constant 0 : index
    %c0_0 = arith.constant 0 : index
    %0 = vector.load %arg2[%c0, %c0_0] : memref<128x8xf32, #tpu.memory_space<vmem>>, vector<128x8xf32>
    %c0_1 = arith.constant 0 : index
    %c0_2 = arith.constant 0 : index
    %1 = vector.load %arg1[%c0_1, %c0_2] : memref<8x128xf32, #tpu.memory_space<vmem>>, vector<8x128xf32>
    %cst = arith.constant dense<0.000000e+00> : vector<128x128xf32>
    %2 = tpu.matmul %0, %1, %cst {dimension_numbers = #tpu.dot_dimension_numbers<[1], [0], [0], [1], [0, 0, 1, 1], [], []>} : vector<128x8xf32>, vector<8x128xf32>, vector<128x128xf32> -> vector<128x128xf32>
    %c0_3 = arith.constant 0 : index
    %c0_4 = arith.constant 0 : index
    %3 = vector.load %arg4[%c0_3, %c0_4] : memref<136x1xf32, #tpu.memory_space<vmem>>, vector<128x1xf32>
    %4 = vector.broadcast %3 : vector<128x1xf32> to vector<128x128xf32>
    %5 = arith.addf %2, %4 : vector<128x128xf32>
    %cst_5 = arith.constant 0.000000e+00 : f32
    %6 = vector.broadcast %cst_5 : f32 to vector<128x128xf32>
    %7 = arith.maximumf %5, %6 : vector<128x128xf32>
    %c0_6 = arith.constant 0 : index
    %c0_7 = arith.constant 0 : index
    %8 = vector.load %arg3[%c0_6, %c0_7] : memref<8x128xf32, #tpu.memory_space<vmem>>, vector<8x128xf32>
    %cst_8 = arith.constant dense<0.000000e+00> : vector<8x128xf32>
    %9 = tpu.matmul %8, %7, %cst_8 {dimension_numbers = #tpu.dot_dimension_numbers<[1], [0], [0], [1], [0, 0, 1, 1], [], []>} : vector<8x128xf32>, vector<128x128xf32>, vector<8x128xf32> -> vector<8x128xf32>
    %c128 = arith.constant 128 : index
    %c0_9 = arith.constant 0 : index
    %10 = vector.load %arg4[%c128, %c0_9] : memref<136x1xf32, #tpu.memory_space<vmem>>, vector<8x1xf32>
    %11 = vector.broadcast %10 : vector<8x1xf32> to vector<8x128xf32>
    %12 = arith.addf %9, %11 : vector<8x128xf32>
    %c0_10 = arith.constant 0 : index
    %c0_11 = arith.constant 0 : index
    %13 = vector.load %arg5[%c0_10, %c0_11] : memref<8x128xf32, #tpu.memory_space<vmem>>, vector<8x128xf32>
    tpu.vector_store %arg5[%c0_10, %c0_11], %12 {strides = array<i32>} : memref<8x128xf32, #tpu.memory_space<vmem>>, vector<8x128xf32>,
    return
  }
  func.func @transform_0(%arg0: i32) -> (i32, i32) {
    %c0_i32 = arith.constant 0 : i32
    %c0_i32_0 = arith.constant 0 : i32
    return %c0_i32, %arg0 : i32, i32
  }
  func.func @transform_1(%arg0: i32) -> (i32, i32) {
    %c0_i32 = arith.constant 0 : i32
    %c0_i32_0 = arith.constant 0 : i32
    %c0_i32_1 = arith.constant 0 : i32
    return %c0_i32, %c0_i32_0 : i32, i32
  }
  func.func @transform_2(%arg0: i32) -> (i32, i32) {
    %c0_i32 = arith.constant 0 : i32
    %c0_i32_0 = arith.constant 0 : i32
    %c0_i32_1 = arith.constant 0 : i32
    return %c0_i32, %c0_i32_0 : i32, i32
  }
  func.func @transform_3(%arg0: i32) -> (i32, i32) {
    %c0_i32 = arith.constant 0 : i32
    %c0_i32_0 = arith.constant 0 : i32
    %c0_i32_1 = arith.constant 0 : i32
    return %c0_i32, %c0_i32_0 : i32, i32
  }
  func.func @transform_4(%arg0: i32) -> (i32, i32) {
    %c0_i32 = arith.constant 0 : i32
    %c0_i32_0 = arith.constant 0 : i32
    return %c0_i32, %arg0 : i32, i32
  }
}

</mosaic_0001>

<bundles_post_ra>
// kernel: tpu_custom_call.1
= control target key start
LH: loop header
LB: loop body
LE: loop exit
PB: predicated region body
PF: predicated region fallthrough
CT: control target
= control target key end

     0   :  { %vm131_vm0 = vcmask 64512   ;;  %v354_v3 = vmov 0   ;;  %s511_s0 = inlined_call_operand.vmem [shape: f32[8,128], index: 0, kind: input, shape index: {}]   ;;  %s512_s1 = inlined_call_operand.vmem [shape: f32[128,8], index: 1, kind: input, shape index: {}]   ;;  %s513_s2 = inlined_call_operand.vmem [shape: f32[8,128], index: 2, kind: input, shape index: {}]   ;;  %s514_s3 = inlined_call_operand.vmem [shape: f32[136,1], index: 3, kind: input, shape index: {}]   ;;  %s515_s4 = inlined_call_operand.hbm [shape: f32[8,128], index: 4, kind: output, shape index: {}]  }
   0x1   :  { %v34_v0 = vld [vmem:[%s511_s0] sm:$0xff]  ;;  %v50_v1 = vld [vmem:[%s514_s3 + $0x78] sm:$0xff]  ;;  %325 = vset.pattern.permute.xlu0 %v354_v3  ;;  %v24_v4 = vld [vmem:[%s512_s1 + $0x30] sm:$0xff]  ;;  %326 = vset.pattern.permute.xlu1 %v354_v3 }
   0x2   :  { %v18_v2 = vld [vmem:[%s512_s1] sm:$0xff]  ;;  %195 = vmatpush.msra.mxu0 %v34_v0  ;;  %321 = vmatpush.msra.mxu2 %v34_v0  ;;  %v48_v6 = vld [vmem:[%s514_s3 + $0x68] sm:$0xff]  ;;  %v46_v7 = vld [vmem:[%s514_s3 + $0x58] sm:$0xff] }
   0x3   :  { %v30_v5 = vld [vmem:[%s512_s1 + $0x60] sm:$0xff]  ;;  %322 = vmatpush.msra.mxu3 %v34_v0  ;;  %128 = vperm.xlu0 %325, %v50_v1   ;;  %v49_v8 = vld [vmem:[%s514_s3 + $0x70] sm:$0xff]  ;;  %v19_v9 = vld [vmem:[%s512_s1 + $0x8] sm:$0xff] }
   0x4   :  { %305 = vmatmul.msk.f32.vlgmr.msra.gmra.mxu0 %vm131_vm0, %v18_v2  ;;  %311 = vmatmul.msk.f32.vlgmr.msra.gmra.mxu2 %vm131_vm0, %v24_v4  ;;  %v25_v10 = vld [vmem:[%s512_s1 + $0x38] sm:$0xff]  ;;  %v31_v11 = vld [vmem:[%s512_s1 + $0x68] sm:$0xff] }
   0x5   :  { %317 = vmatmul.msk.f32.vlgmr.msra.gmra.mxu3 %vm131_vm0, %v30_v5  ;;  %327 = vset.pattern.permute.xlu2 %v354_v3 }
   0x6   :  { %118 = vperm.xlu1 %326, %v48_v6   ;;  %108 = vperm.xlu2 %327, %v46_v7  }
   0x7   :  { %9 = vsyncpa [#allocation3], 0  ;;  %v47_v12 = vld [vmem:[%s514_s3 + $0x60] sm:$0xff]  ;;  %v45_v13 = vld [vmem:[%s514_s3 + $0x50] sm:$0xff]  ;;  %s355_s28 = smov [#allocation2]   ;;  %s296_s6 = sshll.u32 %s515_s4, 4  ;;  %s297_s6 = int_to_ptr.hbm [resolvable:$true] %s296_s6 }
   0x8   :  { %v44_v14 = vld [vmem:[%s514_s3 + $0x48] sm:$0xff]  ;;  %v20_v15 = vld [vmem:[%s512_s1 + $0x10] sm:$0xff]  ;;  %v26_v16 = vld [vmem:[%s512_s1 + $0x40] sm:$0xff]  ;;  %s294_s29 = sshll.u32 %s355_s28, 4  ;;  %s295_s29 = int_to_ptr.vmem [resolvable:$true] %s294_s29 }
   0x9   :  { %v32_v17 = vld [vmem:[%s512_s1 + $0x70] sm:$0xff]  ;;  %v43_v18 = vld [vmem:[%s514_s3 + $0x40] sm:$0xff]  ;;  %v42_v19 = vld [vmem:[%s514_s3 + $0x38] sm:$0xff] }
   0xa   :  { %v41_v20 = vld [vmem:[%s514_s3 + $0x30] sm:$0xff]  ;;  %v21_v21 = vld [vmem:[%s512_s1 + $0x18] sm:$0xff]  ;;  %v27_v22 = vld [vmem:[%s512_s1 + $0x48] sm:$0xff] }
   0xb   :  { %123 = vperm.xlu0 %325, %v49_v8   ;;  %v33_v23 = vld [vmem:[%s512_s1 + $0x78] sm:$0xff]  ;;  %v40_v24 = vld [vmem:[%s514_s3 + $0x28] sm:$0xff]  ;;  %v39_v25 = vld [vmem:[%s514_s3 + $0x20] sm:$0xff] }
   0xc   :  { %306 = vmatmul.msk.f32.gmra.mxu0 %vm131_vm0, %v19_v9  ;;  %312 = vmatmul.msk.f32.gmra.mxu2 %vm131_vm0, %v25_v10  ;;  %v38_v26 = vld [vmem:[%s514_s3 + $0x18] sm:$0xff]  ;;  %v22_v27 = vld [vmem:[%s512_s1 + $0x20] sm:$0xff]  ;;  %v28_v28 = vld [vmem:[%s512_s1 + $0x50] sm:$0xff] }
   0xd   :  { %318 = vmatmul.msk.f32.gmra.mxu3 %vm131_vm0, %v31_v11  ;;  %v37_v29 = vld [vmem:[%s514_s3 + $0x10] sm:$0xff]  ;;  %v36_v30 = vld [vmem:[%s514_s3 + $0x8] sm:$0xff]  ;;  %v35_v31 = vld [vmem:[%s514_s3] sm:$0xff] }
   0xe   :  { %113 = vperm.xlu1 %326, %v47_v12   ;;  %103 = vperm.xlu2 %327, %v45_v13   ;;  %v23_v32 = vld [vmem:[%s512_s1 + $0x28] sm:$0xff]  ;;  %v29_v33 = vld [vmem:[%s512_s1 + $0x58] sm:$0xff]  ;;  %v262_v34 = vld [vmem:[%s514_s3 + $0x80] sm:$0xff] }
  0x13   :  { %98 = vperm.xlu0 %325, %v44_v14  }
  0x14   :  { %307 = vmatmul.msk.f32.gmra.mxu0 %vm131_vm0, %v20_v15  ;;  %313 = vmatmul.msk.f32.gmra.mxu2 %vm131_vm0, %v26_v16 }
  0x15   :  { %319 = vmatmul.msk.f32.gmra.mxu3 %vm131_vm0, %v32_v17 }
  0x16   :  { %93 = vperm.xlu1 %326, %v43_v18   ;;  %88 = vperm.xlu2 %327, %v42_v19  }
  0x1b   :  { %83 = vperm.xlu0 %325, %v41_v20  }
  0x1c   :  { %308 = vmatmul.msk.f32.gmra.mxu0 %vm131_vm0, %v21_v21  ;;  %314 = vmatmul.msk.f32.gmra.mxu2 %vm131_vm0, %v27_v22 }
  0x1d   :  { %320 = vmatmul.msk.f32.gmra.mxu3 %vm131_vm0, %v33_v23 }
  0x1e   :  { %78 = vperm.xlu1 %326, %v40_v24   ;;  %73 = vperm.xlu2 %327, %v39_v25  }
  0x23   :  { %68 = vperm.xlu0 %325, %v38_v26  }
  0x24   :  { %309 = vmatmul.msk.f32.gmra.mxu0 %vm131_vm0, %v22_v27  ;;  %315 = vmatmul.msk.f32.gmra.mxu2 %vm131_vm0, %v28_v28 }
  0x26   :  { %63 = vperm.xlu1 %326, %v37_v29   ;;  %58 = vperm.xlu2 %327, %v36_v30  }
  0x2b   :  { %53 = vperm.xlu0 %325, %v35_v31  }
  0x2c   :  { %310 = vmatmul.msk.f32.gmra.mxu0 %vm131_vm0, %v23_v32  ;;  %316 = vmatmul.msk.f32.gmra.mxu2 %vm131_vm0, %v29_v33 }
  0x2e   :  { %265 = vperm.xlu1 %326, %v262_v34  }
  0x60   :  { %v109_v43 = vpop.permute.xlu2 %108 }
  0x68   :  { %v104_v53 = vpop.permute.xlu2 %103 }
  0x70   :  { %v89_v0 = vpop.permute.xlu2 %88 }
  0x75   :  { %v129_v38 = vpop.permute.xlu0 %128 }
  0x78   :  { %v119_v42 = vpop.permute.xlu1 %118  ;;  %v74_v11 = vpop.permute.xlu2 %73 }
  0x7d   :  { %v124_v46 = vpop.permute.xlu0 %123 }
  0x80   :  { %v114_v52 = vpop.permute.xlu1 %113  ;;  %v59_v25 = vpop.permute.xlu2 %58 }
  0x81   :  { %v499_v35 = vpop.f32.mrf.mxu0 }
  0x85   :  { %v99_v56 = vpop.permute.xlu0 %98 }
  0x87   :  { %v215_v36 = vpop.f32.mrf.mxu2 }
  0x88   :  { %v233_v37 = vpop.f32.mrf.mxu3  ;;  %v94_v63 = vpop.permute.xlu1 %93 }
  0x89   :  { %v501_v39 = vpop.f32.mrf.mxu0  ;;  %v234_v58 = vadd.f32 %v233_v37, %v114_v52 }
  0x8a   :  { %v201_v30 = vadd.f32 %v501_v39, %v59_v25 }
  0x8b   :  { %v257_v62 = vmax.f32 %v234_v58, 0.0 }
  0x8c   :  { %v246_v33 = vmax.f32 %v201_v30, 0.0 }
  0x8d   :  { %v84_v1 = vpop.permute.xlu0 %83 }
  0x8e   :  { %v216_v16 = vadd.f32 %v215_v36, %v84_v1  ;;  %v261_v36 = vld [vmem:[%s513_s2] sm:$0xff] }
  0x8f   :  { %v218_v40 = vpop.f32.mrf.mxu2 }
  0x90   :  { %v236_v41 = vpop.f32.mrf.mxu3  ;;  %v79_v10 = vpop.permute.xlu1 %78  ;;  %v219_v12 = vadd.f32 %v218_v40, %v89_v0  ;;  %v251_v20 = vmax.f32 %v216_v16, 0.0 }
  0x91   :  { %v203_v47 = vpop.f32.mrf.mxu0  ;;  %v237_v54 = vadd.f32 %v236_v41, %v119_v42 }
  0x92   :  { %v252_v18 = vmax.f32 %v219_v12, 0.0 }
  0x93   :  { %v258_v60 = vmax.f32 %v237_v54, 0.0 }
  0x95   :  { %v69_v14 = vpop.permute.xlu0 %68 }
  0x97   :  { %v221_v44 = vpop.f32.mrf.mxu2 }
  0x98   :  { %v239_v45 = vpop.f32.mrf.mxu3  ;;  %v222_v8 = vadd.f32 %v221_v44, %v94_v63  ;;  %v64_v24 = vpop.permute.xlu1 %63 }
  0x99   :  { %v240_v50 = vadd.f32 %v239_v45, %v124_v46  ;;  %v206_v57 = vpop.f32.mrf.mxu0  ;;  %v204_v26 = vadd.f32 %v203_v47, %v64_v24 }
  0x9a   :  { %v253_v17 = vmax.f32 %v222_v8, 0.0  ;;  %v207_v22 = vadd.f32 %v206_v57, %v69_v14 }
  0x9b   :  { %v259_v59 = vmax.f32 %v240_v50, 0.0  ;;  %v247_v31 = vmax.f32 %v204_v26, 0.0 }
  0x9c   :  { %v248_v29 = vmax.f32 %v207_v22, 0.0 }
  0x9d   :  { %v54_v28 = vpop.permute.xlu0 %53 }
  0x9e   :  { %v198_v32 = vadd.f32 %v499_v35, %v54_v28 }
  0x9f   :  { %v224_v48 = vpop.f32.mrf.mxu2 }
  0xa0   :  { %v242_v49 = vpop.f32.mrf.mxu3  ;;  %v225_v6 = vadd.f32 %v224_v48, %v99_v56  ;;  %v245_v34 = vmax.f32 %v198_v32, 0.0  ;;  %v266_v37 = vpop.permute.xlu1 %265 }
  0xa1   :  { %v243_v51 = vadd.f32 %v242_v49, %v129_v38  ;;  %v209_v2 = vpop.f32.mrf.mxu0 }
  0xa2   :  { %v254_v13 = vmax.f32 %v225_v6, 0.0  ;;  %v210_v21 = vadd.f32 %v209_v2, %v74_v11 }
  0xa3   :  { %v260_v55 = vmax.f32 %v243_v51, 0.0 }
  0xa4   :  { %v249_v27 = vmax.f32 %v210_v21, 0.0 }
  0xa5   :  { %268 = vmatpush.msra.mxu1 %v260_v55 }
  0xa7   :  { %269 = vmatpush.msra.mxu1 %v259_v59  ;;  %v227_v61 = vpop.f32.mrf.mxu2 }
  0xa8   :  { %v228_v4 = vadd.f32 %v227_v61, %v104_v53 }
  0xa9   :  { %270 = vmatpush.msra.mxu1 %v258_v60  ;;  %v212_v15 = vpop.f32.mrf.mxu0 }
  0xaa   :  { %v255_v9 = vmax.f32 %v228_v4, 0.0  ;;  %v213_v19 = vadd.f32 %v212_v15, %v79_v10 }
  0xab   :  { %271 = vmatpush.msra.mxu1 %v257_v62 }
  0xac   :  { %v250_v23 = vmax.f32 %v213_v19, 0.0 }
  0xaf   :  { %v230_v3 = vpop.f32.mrf.mxu2 }
  0xb0   :  { %v231_v5 = vadd.f32 %v230_v3, %v109_v43 }
  0xb2   :  { %v256_v7 = vmax.f32 %v231_v5, 0.0 }
  0xb4   :  { %272 = vmatpush.msra.mxu1 %v256_v7 }
  0xb6   :  { %273 = vmatpush.msra.mxu1 %v255_v9 }
  0xb8   :  { %274 = vmatpush.msra.mxu1 %v254_v13 }
  0xba   :  { %275 = vmatpush.msra.mxu1 %v253_v17 }
  0xbc   :  { %276 = vmatpush.msra.mxu1 %v252_v18 }
  0xbe   :  { %277 = vmatpush.msra.mxu1 %v251_v20 }
  0xc0   :  { %278 = vmatpush.msra.mxu1 %v250_v23 }
  0xc2   :  { %279 = vmatpush.msra.mxu1 %v249_v27 }
  0xc4   :  { %280 = vmatpush.msra.mxu1 %v248_v29 }
  0xc6   :  { %281 = vmatpush.msra.mxu1 %v247_v31 }
  0xc8   :  { %282 = vmatpush.msra.mxu1 %v246_v33 }
  0xca   :  { %283 = vmatpush.msra.mxu1 %v245_v34 }
  0xcb   :  { %284 = vmatmul.f32.vlgmr.msra.gmra.mxu1 %v261_v36 }
 0x148   :  { %v285_v38 = vpop.f32.mrf.mxu1 }
 0x149   :  { %v286_v35 = vadd.f32 %v285_v38, %v266_v37 }
 0x14b   :  { %288 = vst [vmem:[#allocation2] sm:$0xff] %v286_v35 }
 0x14c   :  { %299 = dma.vmem_to_hbm [thread:$0]  %s295_s29, 128, %s297_s6, [#allocation3]  }
 0x14d   :  { %352 = dma.done.wait [#allocation3], 128  }
 0x14e   :  { %353 = vsyncadd [#allocation3], 4294967168 }
 0x14f   :  { %304 = vsyncpa [#allocation3], 1 }

</bundles_post_ra>
